<compile_context>
chip_gen: v7x
topology: tpu7x:2x2x1
jax: 0.10.0
libtpu: 0.0.40
codegen_flags: <defaults>
</compile_context>

<pallas_src>
import functools

import jax
import jax.numpy as jnp
from jax import lax
from jax.experimental import pallas as pl
from jax.experimental.pallas import tpu as pltpu


def _round_up(x, m):
    return (x + m - 1) // m * m


def _cdiv(a, b):
    return (a + b - 1) // b


def mlp_kernel(x_ref, w1_ref, b1_ref, w2_ref, b2_ref, w3_ref, b3_ref,
               w4t_ref, b4_ref, o_ref):
    # One batch tile, all four layers fused in VMEM. Matmul operands are bf16;
    # accumulation, bias adds, ReLU and the sigmoid stay f32.
    x = x_ref[...].astype(jnp.bfloat16)   # no-op if the producer supplies bf16

    h1 = jnp.dot(x, w1_ref[...], preferred_element_type=jnp.float32) + b1_ref[...]
    h1 = jnp.maximum(h1, 0.0).astype(jnp.bfloat16)      # ReLU (dropout = identity, eval)

    h2 = jnp.dot(h1, w2_ref[...], preferred_element_type=jnp.float32) + b2_ref[...]
    h2 = jnp.maximum(h2, 0.0).astype(jnp.bfloat16)

    h3 = jnp.dot(h2, w3_ref[...], preferred_element_type=jnp.float32) + b3_ref[...]
    h3 = jnp.maximum(h3, 0.0).astype(jnp.bfloat16)      # (tile, 64)

    # Final (64 -> 1) layer, transposed: contract the 64-dim of the (1, 64)
    # weight row against h3's 64-dim -> lane-dense (1, tile) logits row
    # (no N=1 matmul wasting MXU columns, no masked 4-byte column stores).
    logits = lax.dot_general(
        w4t_ref[...], h3,
        dimension_numbers=(((1,), (1,)), ((), ())),
        preferred_element_type=jnp.float32) + b4_ref[...]          # (1, tile)

    # Exact sigmoid: exp on the EUP, one f32 divide on the VPU (not a
    # bottleneck here; the approx reciprocal only added error).
    o_ref[...] = 1.0 / (1.0 + jnp.exp(-logits))


def prepare_params(params):
    """One-time weight prep: bf16 matmul operands, w4 pre-flattened to a (1, 64) row.

    Do this once (e.g. at load time) so the per-call forward pays no
    convert/reshape HBM passes.
    """
    return {
        "w1": params["w1"].astype(jnp.bfloat16),
        "w2": params["w2"].astype(jnp.bfloat16),
        "w3": params["w3"].astype(jnp.bfloat16),
        "w4t": params["w4"].reshape(1, -1).astype(jnp.bfloat16),
        "b1": params["b1"].astype(jnp.float32),
        "b2": params["b2"].astype(jnp.float32),
        "b3": params["b3"].astype(jnp.float32),
        "b4": params["b4"].astype(jnp.float32),
    }


def truth_classifier_forward(x, prep, *, batch_tile=1024):
    """x: (B, input_size) f32 or bf16. prep: output of prepare_params()."""
    B, D = x.shape

    # 128-aligned batch tile (lane-dense output, aligned MXU M). Small batches
    # collapse to a single 128-row tile; large batches use up to `batch_tile`
    # rows per grid step (multiple of 256 by default) to amortize the ~0.35 us
    # per-step pipeline overhead.
    tile = min(batch_tile, _round_up(B, 128))
    # Guarantee >=2 grid tiles when the batch allows it so the ("parallel",)
    # axis shards across both TensorCores on v7x (no effect on 1-TC v5e/v6e).
    if B > 128 and _cdiv(B, tile) < 2:
        tile = max(128, _round_up(_cdiv(B, 2), 128))

    Bp = _round_up(B, tile)
    if Bp != B:
        x = jnp.pad(x, ((0, Bp - B), (0, 0)))
    num_tiles = Bp // tile

    w1, w2, w3, w4t = prep["w1"], prep["w2"], prep["w3"], prep["w4t"]
    b1, b2, b3, b4 = prep["b1"], prep["b2"], prep["b3"], prep["b4"]

    # Weights/biases: constant index_map (fetched once, VMEM-resident) and
    # single-buffered — no point double-buffering operands that never change.
    const = lambda a: pl.BlockSpec(a.shape, lambda i: (0, 0),
                                   pipeline_mode=pl.Buffered(1))

    # Only raise the scoped-VMEM limit when sweeping very large tiles
    # (v5e's default scoped VMEM is 16 MiB).
    vmem_limit = (48 * 1024 * 1024) if tile >= 2048 else None

    out_rows = pl.pallas_call(
        mlp_kernel,
        out_shape=jax.ShapeDtypeStruct((num_tiles, tile), jnp.float32),
        grid_spec=pltpu.PrefetchScalarGridSpec(
            num_scalar_prefetch=0,
            grid=(num_tiles,),
            in_specs=[
                # x batch tile (dominant HBM stream); default double-buffered.
                pl.BlockSpec((tile, D), lambda i: (i, 0)),
                const(w1), const(b1),
                const(w2), const(b2),
                const(w3), const(b3),
                const(w4t), const(b4),
            ],
            out_specs=pl.BlockSpec((1, tile), lambda i: (i, 0)),  # lane-dense row
        ),
        compiler_params=pltpu.CompilerParams(
            dimension_semantics=("parallel",),        # megacore sharding on v7x
            vmem_limit_bytes=vmem_limit),
    )(x, w1, b1, w2, b2, w3, b3, w4t, b4)

    # (num_tiles, tile) lane-dense rows back to the (B, 1) column the module returns.
    return out_rows.reshape(Bp, 1)[:B]


# jit the whole forward so padding/reshape fuse and the kernel is dispatched once.
truth_classifier_apply = jax.jit(truth_classifier_forward,
                                 static_argnames=("batch_tile",))


def init_params(key, input_size):
    """Deterministic init mimicking nn.Linear's U(-1/sqrt(fan_in), 1/sqrt(fan_in))."""
    dims = [(input_size, 256), (256, 128), (128, 64), (64, 1)]
    params = {}
    for idx, (fan_in, fan_out) in enumerate(dims, start=1):
        key, kw, kb = jax.random.split(key, 3)
        bound = 1.0 / (fan_in ** 0.5)
        params[f"w{idx}"] = jax.random.uniform(
            kw, (fan_in, fan_out), jnp.float32, minval=-bound, maxval=bound)
        params[f"b{idx}"] = jax.random.uniform(
            kb, (1, fan_out), jnp.float32, minval=-bound, maxval=bound)
    return params


def reference_forward(x, p):
    h = jnp.maximum(x @ p["w1"] + p["b1"], 0.0)
    h = jnp.maximum(h @ p["w2"] + p["b2"], 0.0)
    h = jnp.maximum(h @ p["w3"] + p["b3"], 0.0)
    return jax.nn.sigmoid(h @ p["w4"] + p["b4"])


if __name__ == "__main__":
    key = jax.random.PRNGKey(0)
    input_size = 32

    params = init_params(key, input_size)
    prep = prepare_params(params)          # one-time weight prep (hoisted)

    # Small batch: single 128-row tile path.
    key, kx1 = jax.random.split(key)
    x_small = jax.random.normal(kx1, (8, input_size), jnp.float32)
    out_small = jax.block_until_ready(truth_classifier_apply(x_small, prep))
    ref_small = reference_forward(x_small, params)
    assert out_small.shape == (8, 1)
    assert jnp.allclose(out_small, ref_small, atol=2e-2, rtol=0.0), "small-batch mismatch"

    # Larger, non-multiple batch: exercises padding + the >=2-tile split path.
    key, kx2 = jax.random.split(key)
    x_big = jax.random.normal(kx2, (300, input_size), jnp.float32)
    out_big = jax.block_until_ready(truth_classifier_apply(x_big, prep))
    ref_big = reference_forward(x_big, params)
    assert out_big.shape == (300, 1)
    assert jnp.allclose(out_big, ref_big, atol=2e-2, rtol=0.0), "multi-tile mismatch"

    print("KERNEL_OK")
</pallas_src>

<mosaic_0001>
module attributes {stable_mosaic.version = 11 : i64} {
  func.func @mlp_kernel(%arg0: i32, %arg1: memref<128x32xf32, #tpu.memory_space<vmem>>, %arg2: memref<32x256xbf16, #tpu.memory_space<vmem>>, %arg3: memref<1x256xf32, #tpu.memory_space<vmem>>, %arg4: memref<256x128xbf16, #tpu.memory_space<vmem>>, %arg5: memref<1x128xf32, #tpu.memory_space<vmem>>, %arg6: memref<128x64xbf16, #tpu.memory_space<vmem>>, %arg7: memref<1x64xf32, #tpu.memory_space<vmem>>, %arg8: memref<1x64xbf16, #tpu.memory_space<vmem>>, %arg9: memref<1x1xf32, #tpu.memory_space<vmem>>, %arg10: memref<1x128xf32, #tpu.memory_space<vmem>>) attributes {dimension_semantics = [#tpu.dimension_semantics<parallel>], iteration_bounds = array<i64: 1>, scalar_prefetch = 0 : i64, scratch_operands = 0 : i64, tpu.core_type = #tpu.core_type<tc>, window_params = [{transform_indices = @transform_0, window_bounds = array<i64: 128, 32>}, {pipeline_mode = #tpu.pipeline_mode<synchronous>, transform_indices = @transform_1, window_bounds = array<i64: 32, 256>}, {pipeline_mode = #tpu.pipeline_mode<synchronous>, transform_indices = @transform_2, window_bounds = array<i64: 1, 256>}, {pipeline_mode = #tpu.pipeline_mode<synchronous>, transform_indices = @transform_3, window_bounds = array<i64: 256, 128>}, {pipeline_mode = #tpu.pipeline_mode<synchronous>, transform_indices = @transform_4, window_bounds = array<i64: 1, 128>}, {pipeline_mode = #tpu.pipeline_mode<synchronous>, transform_indices = @transform_5, window_bounds = array<i64: 128, 64>}, {pipeline_mode = #tpu.pipeline_mode<synchronous>, transform_indices = @transform_6, window_bounds = array<i64: 1, 64>}, {pipeline_mode = #tpu.pipeline_mode<synchronous>, transform_indices = @transform_7, window_bounds = array<i64: 1, 64>}, {pipeline_mode = #tpu.pipeline_mode<synchronous>, transform_indices = @transform_8, window_bounds = array<i64: 1, 1>}, {transform_indices = @transform_9, window_bounds = array<i64: 1, 128>}]} {
    %c0 = arith.constant 0 : index
    %c0_0 = arith.constant 0 : index
    %0 = vector.load %arg1[%c0, %c0_0] : memref<128x32xf32, #tpu.memory_space<vmem>>, vector<128x32xf32>
    %1 = arith.truncf %0 : vector<128x32xf32> to vector<128x32xbf16>
    %c0_1 = arith.constant 0 : index
    %c0_2 = arith.constant 0 : index
    %2 = vector.load %arg2[%c0_1, %c0_2] : memref<32x256xbf16, #tpu.memory_space<vmem>>, vector<32x256xbf16>
    %cst = arith.constant dense<0.000000e+00> : vector<128x256xf32>
    %3 = tpu.matmul %1, %2, %cst {dimension_numbers = #tpu.dot_dimension_numbers<[1], [0], [0], [1], [0, 0, 1, 1], [], []>} : vector<128x32xbf16>, vector<32x256xbf16>, vector<128x256xf32> -> vector<128x256xf32>
    %c0_3 = arith.constant 0 : index
    %c0_4 = arith.constant 0 : index
    %4 = vector.load %arg3[%c0_3, %c0_4] : memref<1x256xf32, #tpu.memory_space<vmem>>, vector<1x256xf32>
    %5 = vector.broadcast %4 : vector<1x256xf32> to vector<128x256xf32>
    %6 = arith.addf %3, %5 : vector<128x256xf32>
    %cst_5 = arith.constant 0.000000e+00 : f32
    %7 = vector.broadcast %cst_5 : f32 to vector<128x256xf32>
    %8 = arith.maximumf %6, %7 : vector<128x256xf32>
    %9 = arith.truncf %8 : vector<128x256xf32> to vector<128x256xbf16>
    %c0_6 = arith.constant 0 : index
    %c0_7 = arith.constant 0 : index
    %10 = vector.load %arg4[%c0_6, %c0_7] : memref<256x128xbf16, #tpu.memory_space<vmem>>, vector<256x128xbf16>
    %cst_8 = arith.constant dense<0.000000e+00> : vector<128x128xf32>
    %11 = tpu.matmul %9, %10, %cst_8 {dimension_numbers = #tpu.dot_dimension_numbers<[1], [0], [0], [1], [0, 0, 1, 1], [], []>} : vector<128x256xbf16>, vector<256x128xbf16>, vector<128x128xf32> -> vector<128x128xf32>
    %c0_9 = arith.constant 0 : index
    %c0_10 = arith.constant 0 : index
    %12 = vector.load %arg5[%c0_9, %c0_10] : memref<1x128xf32, #tpu.memory_space<vmem>>, vector<1x128xf32>
    %13 = vector.broadcast %12 : vector<1x128xf32> to vector<128x128xf32>
    %14 = arith.addf %11, %13 : vector<128x128xf32>
    %cst_11 = arith.constant 0.000000e+00 : f32
    %15 = vector.broadcast %cst_11 : f32 to vector<128x128xf32>
    %16 = arith.maximumf %14, %15 : vector<128x128xf32>
    %17 = arith.truncf %16 : vector<128x128xf32> to vector<128x128xbf16>
    %c0_12 = arith.constant 0 : index
    %c0_13 = arith.constant 0 : index
    %18 = vector.load %arg6[%c0_12, %c0_13] : memref<128x64xbf16, #tpu.memory_space<vmem>>, vector<128x64xbf16>
    %cst_14 = arith.constant dense<0.000000e+00> : vector<128x64xf32>
    %19 = tpu.matmul %17, %18, %cst_14 {dimension_numbers = #tpu.dot_dimension_numbers<[1], [0], [0], [1], [0, 0, 1, 1], [], []>} : vector<128x128xbf16>, vector<128x64xbf16>, vector<128x64xf32> -> vector<128x64xf32>
    %c0_15 = arith.constant 0 : index
    %c0_16 = arith.constant 0 : index
    %20 = vector.load %arg7[%c0_15, %c0_16] : memref<1x64xf32, #tpu.memory_space<vmem>>, vector<1x64xf32>
    %21 = vector.broadcast %20 : vector<1x64xf32> to vector<128x64xf32>
    %22 = arith.addf %19, %21 : vector<128x64xf32>
    %cst_17 = arith.constant 0.000000e+00 : f32
    %23 = vector.broadcast %cst_17 : f32 to vector<128x64xf32>
    %24 = arith.maximumf %22, %23 : vector<128x64xf32>
    %25 = arith.truncf %24 : vector<128x64xf32> to vector<128x64xbf16>
    %c0_18 = arith.constant 0 : index
    %c0_19 = arith.constant 0 : index
    %26 = vector.load %arg8[%c0_18, %c0_19] : memref<1x64xbf16, #tpu.memory_space<vmem>>, vector<1x64xbf16>
    %cst_20 = arith.constant dense<0.000000e+00> : vector<1x128xf32>
    %27 = tpu.matmul %26, %25, %cst_20 {dimension_numbers = #tpu.dot_dimension_numbers<[1], [1], [0], [0], [0, 0, 1, 0], [], []>} : vector<1x64xbf16>, vector<128x64xbf16>, vector<1x128xf32> -> vector<1x128xf32>
    %c0_21 = arith.constant 0 : index
    %c0_22 = arith.constant 0 : index
    %28 = vector.load %arg9[%c0_21, %c0_22] : memref<1x1xf32, #tpu.memory_space<vmem>>, vector<1x1xf32>
    %29 = vector.broadcast %28 : vector<1x1xf32> to vector<1x128xf32>
    %30 = arith.addf %27, %29 : vector<1x128xf32>
    %cst_23 = arith.constant 0.000000e+00 : f32
    %31 = vector.broadcast %cst_23 : f32 to vector<1x128xf32>
    %32 = arith.subf %31, %30 : vector<1x128xf32>
    %33 = math.exp %32 : vector<1x128xf32>
    %cst_24 = arith.constant 1.000000e+00 : f32
    %34 = vector.broadcast %cst_24 : f32 to vector<1x128xf32>
    %35 = arith.addf %34, %33 : vector<1x128xf32>
    %cst_25 = arith.constant 1.000000e+00 : f32
    %36 = vector.broadcast %cst_25 : f32 to vector<1x128xf32>
    %37 = arith.divf %36, %35 : vector<1x128xf32>
    %c0_26 = arith.constant 0 : index
    %c0_27 = arith.constant 0 : index
    %38 = vector.load %arg10[%c0_26, %c0_27] : memref<1x128xf32, #tpu.memory_space<vmem>>, vector<1x128xf32>
    tpu.vector_store %arg10[%c0_26, %c0_27], %37 {strides = array<i32>} : memref<1x128xf32, #tpu.memory_space<vmem>>, vector<1x128xf32>,
    return
  }
  func.func @transform_0(%arg0: i32) -> (i32, i32) {
    %c0_i32 = arith.constant 0 : i32
    %c0_i32_0 = arith.constant 0 : i32
    return %arg0, %c0_i32 : i32, i32
  }
  func.func @transform_1(%arg0: i32) -> (i32, i32) {
    %c0_i32 = arith.constant 0 : i32
    %c0_i32_0 = arith.constant 0 : i32
    %c0_i32_1 = arith.constant 0 : i32
    return %c0_i32, %c0_i32_0 : i32, i32
  }
  func.func @transform_2(%arg0: i32) -> (i32, i32) {
    %c0_i32 = arith.constant 0 : i32
    %c0_i32_0 = arith.constant 0 : i32
    %c0_i32_1 = arith.constant 0 : i32
    return %c0_i32, %c0_i32_0 : i32, i32
  }
  func.func @transform_3(%arg0: i32) -> (i32, i32) {
    %c0_i32 = arith.constant 0 : i32
    %c0_i32_0 = arith.constant 0 : i32
    %c0_i32_1 = arith.constant 0 : i32
    return %c0_i32, %c0_i32_0 : i32, i32
  }
  func.func @transform_4(%arg0: i32) -> (i32, i32) {
    %c0_i32 = arith.constant 0 : i32
    %c0_i32_0 = arith.constant 0 : i32
    %c0_i32_1 = arith.constant 0 : i32
    return %c0_i32, %c0_i32_0 : i32, i32
  }
  func.func @transform_5(%arg0: i32) -> (i32, i32) {
    %c0_i32 = arith.constant 0 : i32
    %c0_i32_0 = arith.constant 0 : i32
    %c0_i32_1 = arith.constant 0 : i32
    return %c0_i32, %c0_i32_0 : i32, i32
  }
  func.func @transform_6(%arg0: i32) -> (i32, i32) {
    %c0_i32 = arith.constant 0 : i32
    %c0_i32_0 = arith.constant 0 : i32
    %c0_i32_1 = arith.constant 0 : i32
    return %c0_i32, %c0_i32_0 : i32, i32
  }
  func.func @transform_7(%arg0: i32) -> (i32, i32) {
    %c0_i32 = arith.constant 0 : i32
    %c0_i32_0 = arith.constant 0 : i32
    %c0_i32_1 = arith.constant 0 : i32
    return %c0_i32, %c0_i32_0 : i32, i32
  }
  func.func @transform_8(%arg0: i32) -> (i32, i32) {
    %c0_i32 = arith.constant 0 : i32
    %c0_i32_0 = arith.constant 0 : i32
    %c0_i32_1 = arith.constant 0 : i32
    return %c0_i32, %c0_i32_0 : i32, i32
  }
  func.func @transform_9(%arg0: i32) -> (i32, i32) {
    %c0_i32 = arith.constant 0 : i32
    %c0_i32_0 = arith.constant 0 : i32
    return %arg0, %c0_i32 : i32, i32
  }
}

</mosaic_0001>

<bundles_post_ra>
// kernel: truth_classifier_forward.1
= control target key start
LH: loop header
LB: loop body
LE: loop exit
PB: predicated region body
PF: predicated region fallthrough
CT: control target
= control target key end

     0   :  { %v1037_v1 = vmov 0   ;;  %vm95_vm0 = vcmask 261120   ;;  %v65_v51 = vlaneseq  ;;  %vm1039_vm1 = vmmov 0   ;;  %s1355_s1 = inlined_call_operand.vmem [shape: bf16[32,256], index: 1, kind: input, shape index: {}]   ;;  %s1356_s0 = inlined_call_operand.vmem [shape: f32[128,32], index: 0, kind: input, shape index: {}]   ;;  %s1357_s3 = inlined_call_operand.vmem [shape: bf16[256,128], index: 3, kind: input, shape index: {}]   ;;  %s1358_s5 = inlined_call_operand.vmem [shape: bf16[128,64], index: 5, kind: input, shape index: {}]   ;;  %s1359_s2 = inlined_call_operand.vmem [shape: f32[1,256], index: 2, kind: input, shape index: {}]   ;;  %s1360_s4 = inlined_call_operand.vmem [shape: f32[1,128], index: 4, kind: input, shape index: {}]   ;;  %s1361_s8 = inlined_call_operand.<no memory space> [shape: f32[1,1], index: 8, kind: input, shape index: {}]   ;;  %s1362_s6 = inlined_call_operand.vmem [shape: f32[1,64], index: 6, kind: input, shape index: {}]   ;;  %s1363_s7 = inlined_call_operand.vmem [shape: bf16[1,64], index: 7, kind: input, shape index: {}]   ;;  %s1364_s9 = inlined_call_operand.vmem [shape: f32[1,128], index: 9, kind: output, shape index: {}]  }
   0x1   :  { %v1003_v0 = vld [vmem:[%s1355_s1 + $0x4] ss:$8 sps:$4 sm:$0xff]   ;;  %152 = vmatprep.mubr.bf16.mxu0 %v1037_v1  ;;  %1002 = vset.pattern.permute.xlu0 %v1037_v1  ;;  %v1005_v2 = vld [vmem:[%s1355_s1] ss:$8 sps:$4 sm:$0xff]   ;;  %v1006_v3 = vld [vmem:[%s1355_s1 + $0x14] ss:$8 sps:$4 sm:$0xff]  }
   0x2   :  { %120 = vmatprep.subr.bf16.mxu0 %v1003_v0  ;;  %v1008_v4 = vld [vmem:[%s1355_s1 + $0x10] ss:$8 sps:$4 sm:$0xff]   ;;  %v35_v5 = vld [vmem:[%s1356_s0] sm:$0xff]  ;;  %v36_v6 = vld [vmem:[%s1356_s0 + $0x8] sm:$0xff]  ;;  %v1233_v52 = vshrl.u32 %v65_v51, 7  ;;  %vm740_vm2 = vcmask 523264  }
   0x3   :  { %121 = vmatpush1.bf16.msra.mxu0 %v1005_v2  ;;  %v51_v7 = vpack.c.bf16 %v36_v6, %v35_v5  ;;  %v1009_v8 = vld [vmem:[%s1357_s3 + $0x40] sm:$0xff]   ;;  %v37_v9 = vld [vmem:[%s1356_s0 + $0x10] sm:$0xff]  ;;  %v38_v10 = vld [vmem:[%s1356_s0 + $0x18] sm:$0xff] }
   0x4   :  { %122 = vmatprep.subr.bf16.mxu0 %v1006_v3  ;;  %v1010_v11 = vld [vmem:[%s1357_s3] sm:$0xff]   ;;  %858 = vmatprep.subr.bf16.mxu1 %v1009_v8  ;;  %v1011_v12 = vld [vmem:[%s1357_s3 + $0x48] sm:$0xff]   ;;  %v1013_v14 = vld [vmem:[%s1357_s3 + $0x50] sm:$0xff]   ;;  %v52_v15 = vpack.c.bf16 %v38_v10, %v37_v9  ;;  %v67_v53 = vsub.s32 0, %v1233_v52  ;;  %v71_v55 = vsub.s32 1, %v1233_v52 }
   0x5   :  { %859 = vmatpush3.bf16.msra.mxu1 %v1010_v11  ;;  %v1012_v13 = vld [vmem:[%s1357_s3 + $0x8] sm:$0xff]   ;;  %v1014_v16 = vld [vmem:[%s1357_s3 + $0x10] sm:$0xff]   ;;  %v1015_v17 = vld [vmem:[%s1357_s3 + $0x58] sm:$0xff]  }
   0x6   :  { %860 = vmatprep.subr.bf16.mxu1 %v1011_v12  ;;  %v39_v18 = vld [vmem:[%s1356_s0 + $0x20] sm:$0xff]  ;;  %v40_v19 = vld [vmem:[%s1356_s0 + $0x28] sm:$0xff]  ;;  %v1016_v20 = vld [vmem:[%s1357_s3 + $0x18] sm:$0xff]  }
   0x7   :  { %123 = vmatpush1.bf16.msra.mxu0 %v1008_v4  ;;  %v1017_v21 = vld [vmem:[%s1357_s3 + $0x60] sm:$0xff]   ;;  %v53_v22 = vpack.c.bf16 %v40_v19, %v39_v18  ;;  %v1019_v24 = vld [vmem:[%s1357_s3 + $0x68] sm:$0xff]   ;;  %v41_v25 = vld [vmem:[%s1356_s0 + $0x30] sm:$0xff] }
   0x8   :  { %v1018_v23 = vld [vmem:[%s1357_s3 + $0x20] sm:$0xff]   ;;  %v42_v26 = vld [vmem:[%s1356_s0 + $0x38] sm:$0xff]  ;;  %v44_v29 = vld [vmem:[%s1356_s0 + $0x48] sm:$0xff] }
   0x9   :  { %861 = vmatpush3.bf16.msra.mxu1 %v1012_v13  ;;  %v54_v27 = vpack.c.bf16 %v42_v26, %v41_v25  ;;  %v43_v28 = vld [vmem:[%s1356_s0 + $0x40] sm:$0xff]  ;;  %v45_v31 = vld [vmem:[%s1356_s0 + $0x50] sm:$0xff]  ;;  %v46_v32 = vld [vmem:[%s1356_s0 + $0x58] sm:$0xff] }
   0xa   :  { %823 = vmatmul.mubr.msk.bf16.vlgmr.msra.gmra.mrb[0].mxu0 %vm95_vm0, %v51_v7  ;;  %862 = vmatprep.subr.bf16.mxu1 %v1013_v14  ;;  %v55_v30 = vpack.c.bf16 %v44_v29, %v43_v28  ;;  %v56_v33 = vpack.c.bf16 %v46_v32, %v45_v31  ;;  %v47_v34 = vld [vmem:[%s1356_s0 + $0x60] sm:$0xff]  ;;  %v48_v35 = vld [vmem:[%s1356_s0 + $0x68] sm:$0xff]  ;;  %v49_v37 = vld [vmem:[%s1356_s0 + $0x70] sm:$0xff] }
   0xb   :  { %162 = vmatprep.mubr.bf16.mxu0 %v1037_v1  ;;  %v57_v36 = vpack.c.bf16 %v48_v35, %v47_v34  ;;  %v50_v38 = vld [vmem:[%s1356_s0 + $0x78] sm:$0xff]  ;;  %v1020_v40 = vld [vmem:[%s1357_s3 + $0x28] sm:$0xff]   ;;  %v1021_v41 = vld [vmem:[%s1357_s3 + $0x70] sm:$0xff]  }
   0xc   :  { %v58_v39 = vpack.c.bf16 %v50_v38, %v49_v37  ;;  %v1022_v42 = vld [vmem:[%s1357_s3 + $0x30] sm:$0xff]   ;;  %v1023_v43 = vld [vmem:[%s1357_s3 + $0x78] sm:$0xff]   ;;  %v1025_v45 = vld [vmem:[%s1358_s5] sm:$0xff]  }
   0xd   :  { %863 = vmatpush3.bf16.msra.mxu1 %v1014_v16  ;;  %v1024_v44 = vld [vmem:[%s1357_s3 + $0x38] sm:$0xff]   ;;  %v1026_v46 = vld [vmem:[%s1358_s5 + $0x8] sm:$0xff]   ;;  %947 = vmatprep.subr.bf16.mxu0 %v1025_v45  ;;  %v1027_v47 = vld [vmem:[%s1358_s5 + $0x10] sm:$0xff]  }
   0xe   :  { %864 = vmatprep.subr.bf16.mxu1 %v1015_v17  ;;  %948 = vmatpush3.bf16.msra.mxu0 %v1025_v45  ;;  %v1028_v48 = vld [vmem:[%s1358_s5 + $0x18] sm:$0xff]   ;;  %v1029_v49 = vld [vmem:[%s1358_s5 + $0x20] sm:$0xff]   ;;  %v1030_v50 = vld [vmem:[%s1358_s5 + $0x28] sm:$0xff]  }
   0xf   :  { %949 = vmatprep.subr.bf16.mxu0 %v1026_v46  ;;  %v63_v54 = vld [vmem:[%s1359_s2] sm:$0x3] }
  0x10   :  { %v1242_v56 = vrot.slane %v63_v54, %v67_v53  ;;  %v1244_v57 = vrot.slane %v63_v54, %v71_v55 }
  0x11   :  { %865 = vmatpush3.bf16.msra.mxu1 %v1016_v20 }
  0x12   :  { %824 = vmatmul.mubr.msk.bf16.gmra.mrb[4].mxu0 %vm95_vm0, %v52_v15  ;;  %866 = vmatprep.subr.bf16.mxu1 %v1017_v21 }
  0x13   :  { %172 = vmatprep.mubr.bf16.mxu0 %v1037_v1  ;;  %950 = vmatpush3.bf16.msra.mxu0 %v1026_v46 }
  0x14   :  { %951 = vmatprep.subr.bf16.mxu0 %v1027_v47 }
  0x15   :  { %867 = vmatpush3.bf16.msra.mxu1 %v1018_v23 }
  0x16   :  { %868 = vmatprep.subr.bf16.mxu1 %v1019_v24 }
  0x17   :  { %952 = vmatpush3.bf16.msra.mxu0 %v1027_v47 }
  0x18   :  { %953 = vmatprep.subr.bf16.mxu0 %v1028_v48 }
  0x19   :  { %869 = vmatpush3.bf16.msra.mxu1 %v1020_v40 }
  0x1a   :  { %825 = vmatmul.mubr.msk.bf16.gmra.mrb[8].mxu0 %vm95_vm0, %v53_v22  ;;  %870 = vmatprep.subr.bf16.mxu1 %v1021_v41 }
  0x1b   :  { %182 = vmatprep.mubr.bf16.mxu0 %v1037_v1  ;;  %954 = vmatpush3.bf16.msra.mxu0 %v1028_v48 }
  0x1c   :  { %955 = vmatprep.subr.bf16.mxu0 %v1029_v49 }
  0x1d   :  { %871 = vmatpush3.bf16.msra.mxu1 %v1022_v42 }
  0x1e   :  { %872 = vmatprep.subr.bf16.mxu1 %v1023_v43 }
  0x1f   :  { %956 = vmatpush3.bf16.msra.mxu0 %v1029_v49 }
  0x20   :  { %957 = vmatprep.subr.bf16.mxu0 %v1030_v50 }
  0x21   :  { %873 = vmatpush3.bf16.msra.mxu1 %v1024_v44 }
  0x22   :  { %826 = vmatmul.mubr.msk.bf16.gmra.mrb[12].mxu0 %vm95_vm0, %v54_v27 }
  0x23   :  { %192 = vmatprep.mubr.bf16.mxu0 %v1037_v1  ;;  %958 = vmatpush3.bf16.msra.mxu0 %v1030_v50 }
  0x2a   :  { %827 = vmatmul.mubr.msk.bf16.gmra.mrb[16].mxu0 %vm95_vm0, %v55_v30 }
  0x2b   :  { %202 = vmatprep.mubr.bf16.mxu0 %v1037_v1 }
  0x32   :  { %828 = vmatmul.mubr.msk.bf16.gmra.mrb[20].mxu0 %vm95_vm0, %v56_v33 }
  0x33   :  { %212 = vmatprep.mubr.bf16.mxu0 %v1037_v1 }
  0x3a   :  { %829 = vmatmul.mubr.msk.bf16.gmra.mrb[24].mxu0 %vm95_vm0, %v57_v36 }
  0x3b   :  { %222 = vmatprep.mubr.bf16.mxu0 %v1037_v1 }
  0x42   :  { %830 = vmatmul.mubr.msk.bf16.gmra.mrb[28].mxu0 %vm95_vm0, %v58_v39 }
  0xdd   :  { %v154_v58 = vpop.f32.mrb[0].mxu0 }
  0xde   :  { %v155_v59 = vadd.f32 %v154_v58, %v1242_v56  ;;  %v156_v60 = vpop.f32.mrb[1].mxu0 }
  0xdf   :  { %v157_v61 = vadd.f32 %v156_v60, %v1244_v57  ;;  %v158_v62 = vpop.f32.mrb[2].mxu0 }
  0xe0   :  { %v159_v63 = vadd.f32 %v158_v62, %v1242_v56  ;;  %v160_v0 = vpop.f32.mrb[3].mxu0  ;;  %v233_v2 = vmax.f32 %v155_v59, 0.0 }
  0xe1   :  { %v161_v1 = vadd.f32 %v160_v0, %v1244_v57  ;;  %v234_v4 = vmax.f32 %v157_v61, 0.0 }
  0xe2   :  { %v235_v3 = vmax.f32 %v159_v63, 0.0 }
  0xe3   :  { %v236_v5 = vmax.f32 %v161_v1, 0.0 }
  0xe4   :  { %v265_v6 = vpack.c.bf16 %v235_v3, %v233_v2 }
  0xe5   :  { %v164_v7 = vpop.f32.mrb[4].mxu0  ;;  %v266_v8 = vpack.c.bf16 %v236_v5, %v234_v4 }
  0xe6   :  { %v165_v9 = vadd.f32 %v164_v7, %v1242_v56  ;;  %v166_v10 = vpop.f32.mrb[5].mxu0 }
  0xe7   :  { %v167_v11 = vadd.f32 %v166_v10, %v1244_v57  ;;  %v168_v12 = vpop.f32.mrb[6].mxu0  ;;  %448 = vmatprep.mubr.bf16.mxu1 %v266_v8 }
  0xe8   :  { %v169_v13 = vadd.f32 %v168_v12, %v1242_v56  ;;  %v170_v14 = vpop.f32.mrb[7].mxu0  ;;  %449 = vmatmul.mubr.bf16.vlgmr.msra.gmra.mrb[0].mxu1 %v265_v6  ;;  %v237_v16 = vmax.f32 %v165_v9, 0.0 }
  0xe9   :  { %v171_v15 = vadd.f32 %v170_v14, %v1244_v57  ;;  %v238_v18 = vmax.f32 %v167_v11, 0.0 }
  0xea   :  { %v239_v17 = vmax.f32 %v169_v13, 0.0 }
  0xeb   :  { %v240_v19 = vmax.f32 %v171_v15, 0.0 }
  0xec   :  { %v267_v20 = vpack.c.bf16 %v239_v17, %v237_v16 }
  0xed   :  { %v268_v21 = vpack.c.bf16 %v240_v19, %v238_v18  ;;  %v174_v22 = vpop.f32.mrb[8].mxu0 }
  0xee   :  { %v175_v23 = vadd.f32 %v174_v22, %v1242_v56  ;;  %v176_v24 = vpop.f32.mrb[9].mxu0 }
  0xef   :  { %v177_v25 = vadd.f32 %v176_v24, %v1244_v57  ;;  %v178_v26 = vpop.f32.mrb[10].mxu0  ;;  %456 = vmatprep.mubr.bf16.mxu1 %v268_v21 }
  0xf0   :  { %v179_v27 = vadd.f32 %v178_v26, %v1242_v56  ;;  %v180_v28 = vpop.f32.mrb[11].mxu0  ;;  %457 = vmatmul.mubr.bf16.gmra.mrb[4].mxu1 %v267_v20  ;;  %v241_v30 = vmax.f32 %v175_v23, 0.0 }
  0xf1   :  { %v181_v29 = vadd.f32 %v180_v28, %v1244_v57  ;;  %v242_v32 = vmax.f32 %v177_v25, 0.0 }
  0xf2   :  { %v243_v31 = vmax.f32 %v179_v27, 0.0 }
  0xf3   :  { %v244_v33 = vmax.f32 %v181_v29, 0.0 }
  0xf4   :  { %v269_v34 = vpack.c.bf16 %v243_v31, %v241_v30 }
  0xf5   :  { %v270_v35 = vpack.c.bf16 %v244_v33, %v242_v32  ;;  %v184_v36 = vpop.f32.mrb[12].mxu0 }
  0xf6   :  { %v185_v37 = vadd.f32 %v184_v36, %v1242_v56  ;;  %v186_v38 = vpop.f32.mrb[13].mxu0 }
  0xf7   :  { %v187_v39 = vadd.f32 %v186_v38, %v1244_v57  ;;  %v188_v40 = vpop.f32.mrb[14].mxu0  ;;  %464 = vmatprep.mubr.bf16.mxu1 %v270_v35 }
  0xf8   :  { %v189_v41 = vadd.f32 %v188_v40, %v1242_v56  ;;  %v190_v42 = vpop.f32.mrb[15].mxu0  ;;  %465 = vmatmul.mubr.bf16.gmra.mrb[8].mxu1 %v269_v34  ;;  %v245_v44 = vmax.f32 %v185_v37, 0.0 }
  0xf9   :  { %v191_v43 = vadd.f32 %v190_v42, %v1244_v57  ;;  %v246_v46 = vmax.f32 %v187_v39, 0.0 }
  0xfa   :  { %v247_v45 = vmax.f32 %v189_v41, 0.0 }
  0xfb   :  { %v248_v47 = vmax.f32 %v191_v43, 0.0 }
  0xfc   :  { %v271_v48 = vpack.c.bf16 %v247_v45, %v245_v44 }
  0xfd   :  { %v272_v49 = vpack.c.bf16 %v248_v47, %v246_v46  ;;  %v194_v50 = vpop.f32.mrb[16].mxu0  ;;  %v1031_v46 = vld [vmem:[%s1358_s5 + $0x30] sm:$0xff]   ;;  %v1287_v47 = vld [vmem:[%s1360_s4] ss:$0 sm:$0xff] }
  0xfe   :  { %v195_v51 = vadd.f32 %v194_v50, %v1242_v56  ;;  %v196_v54 = vpop.f32.mrb[17].mxu0  ;;  %959 = vmatprep.subr.bf16.mxu0 %v1031_v46 }
  0xff   :  { %v197_v55 = vadd.f32 %v196_v54, %v1244_v57  ;;  %v198_v58 = vpop.f32.mrb[18].mxu0  ;;  %472 = vmatprep.mubr.bf16.mxu1 %v272_v49  ;;  %960 = vmatpush3.bf16.msra.mxu0 %v1031_v46 }
 0x100   :  { %v199_v59 = vadd.f32 %v198_v58, %v1242_v56  ;;  %v200_v60 = vpop.f32.mrb[19].mxu0  ;;  %473 = vmatmul.mubr.bf16.gmra.mrb[12].mxu1 %v271_v48  ;;  %v249_v62 = vmax.f32 %v195_v51, 0.0 }
 0x101   :  { %v201_v61 = vadd.f32 %v200_v60, %v1244_v57  ;;  %v250_v0 = vmax.f32 %v197_v55, 0.0 }
 0x102   :  { %v251_v63 = vmax.f32 %v199_v59, 0.0 }
 0x103   :  { %v252_v1 = vmax.f32 %v201_v61, 0.0 }
 0x104   :  { %v273_v2 = vpack.c.bf16 %v251_v63, %v249_v62 }
 0x105   :  { %v274_v3 = vpack.c.bf16 %v252_v1, %v250_v0  ;;  %v204_v4 = vpop.f32.mrb[20].mxu0 }
 0x106   :  { %v205_v5 = vadd.f32 %v204_v4, %v1242_v56  ;;  %v206_v6 = vpop.f32.mrb[21].mxu0 }
 0x107   :  { %v207_v7 = vadd.f32 %v206_v6, %v1244_v57  ;;  %v208_v8 = vpop.f32.mrb[22].mxu0  ;;  %480 = vmatprep.mubr.bf16.mxu1 %v274_v3 }
 0x108   :  { %v209_v9 = vadd.f32 %v208_v8, %v1242_v56  ;;  %v210_v10 = vpop.f32.mrb[23].mxu0  ;;  %481 = vmatmul.mubr.bf16.gmra.mrb[16].mxu1 %v273_v2  ;;  %v253_v12 = vmax.f32 %v205_v5, 0.0 }
 0x109   :  { %v211_v11 = vadd.f32 %v210_v10, %v1244_v57  ;;  %v254_v14 = vmax.f32 %v207_v7, 0.0 }
 0x10a   :  { %v255_v13 = vmax.f32 %v209_v9, 0.0 }
 0x10b   :  { %v256_v15 = vmax.f32 %v211_v11, 0.0 }
 0x10c   :  { %v275_v16 = vpack.c.bf16 %v255_v13, %v253_v12 }
 0x10d   :  { %v276_v17 = vpack.c.bf16 %v256_v15, %v254_v14  ;;  %v214_v18 = vpop.f32.mrb[24].mxu0 }
 0x10e   :  { %v215_v19 = vadd.f32 %v214_v18, %v1242_v56  ;;  %v216_v20 = vpop.f32.mrb[25].mxu0 }
 0x10f   :  { %v217_v21 = vadd.f32 %v216_v20, %v1244_v57  ;;  %v218_v22 = vpop.f32.mrb[26].mxu0  ;;  %488 = vmatprep.mubr.bf16.mxu1 %v276_v17 }
 0x110   :  { %v219_v23 = vadd.f32 %v218_v22, %v1242_v56  ;;  %v220_v24 = vpop.f32.mrb[27].mxu0  ;;  %489 = vmatmul.mubr.bf16.gmra.mrb[20].mxu1 %v275_v16  ;;  %v257_v26 = vmax.f32 %v215_v19, 0.0 }
 0x111   :  { %v221_v25 = vadd.f32 %v220_v24, %v1244_v57  ;;  %v258_v28 = vmax.f32 %v217_v21, 0.0 }
 0x112   :  { %v259_v27 = vmax.f32 %v219_v23, 0.0 }
 0x113   :  { %v260_v29 = vmax.f32 %v221_v25, 0.0 }
 0x114   :  { %v277_v30 = vpack.c.bf16 %v259_v27, %v257_v26 }
 0x115   :  { %v278_v31 = vpack.c.bf16 %v260_v29, %v258_v28  ;;  %v224_v32 = vpop.f32.mrb[28].mxu0 }
 0x116   :  { %v225_v33 = vadd.f32 %v224_v32, %v1242_v56  ;;  %v226_v34 = vpop.f32.mrb[29].mxu0 }
 0x117   :  { %v227_v35 = vadd.f32 %v226_v34, %v1244_v57  ;;  %v228_v36 = vpop.f32.mrb[30].mxu0  ;;  %496 = vmatprep.mubr.bf16.mxu1 %v278_v31 }
 0x118   :  { %v229_v37 = vadd.f32 %v228_v36, %v1242_v56  ;;  %v230_v38 = vpop.f32.mrb[31].mxu0  ;;  %497 = vmatmul.mubr.bf16.gmra.mrb[24].mxu1 %v277_v30  ;;  %v261_v40 = vmax.f32 %v225_v33, 0.0  ;;  %v1032_v56 = vld [vmem:[%s1358_s5 + $0x38] sm:$0xff]  }
 0x119   :  { %v231_v39 = vadd.f32 %v230_v38, %v1244_v57  ;;  %v262_v42 = vmax.f32 %v227_v35, 0.0  ;;  %961 = vmatprep.subr.bf16.mxu0 %v1032_v56 }
 0x11a   :  { %v263_v41 = vmax.f32 %v229_v37, 0.0  ;;  %962 = vmatpush3.bf16.msra.mxu0 %v1032_v56 }
 0x11b   :  { %v264_v43 = vmax.f32 %v231_v39, 0.0 }
 0x11c   :  { %v279_v44 = vpack.c.bf16 %v263_v41, %v261_v40 }
 0x11d   :  { %v280_v45 = vpack.c.bf16 %v264_v43, %v262_v42 }
 0x11f   :  { %504 = vmatprep.mubr.bf16.mxu1 %v280_v45 }
 0x120   :  { %505 = vmatmul.mubr.bf16.gmra.mrb[28].mxu1 %v279_v44 }
 0x1bb   :  { %v874_v57 = vpop.f32.mrb[0].mxu1 }
 0x1bc   :  { %v875_v48 = vpop.f32.mrb[1].mxu1 }
 0x1bd   :  { %v876_v49 = vadd.f32 %v875_v48, %v874_v57  ;;  %v877_v50 = vpop.f32.mrb[2].mxu1 }
 0x1be   :  { %v878_v51 = vpop.f32.mrb[3].mxu1 }
 0x1bf   :  { %v451_v54 = vadd.f32 %v876_v49, %v1287_v47  ;;  %v879_v55 = vadd.f32 %v878_v51, %v877_v50 }
 0x1c1   :  { %v454_v58 = vadd.f32 %v879_v55, %v1287_v47  ;;  %v513_v59 = vmax.f32 %v451_v54, 0.0 }
 0x1c3   :  { %v514_v60 = vmax.f32 %v454_v58, 0.0  ;;  %v880_v61 = vpop.f32.mrb[4].mxu1 }
 0x1c4   :  { %v881_v62 = vpop.f32.mrb[5].mxu1 }
 0x1c5   :  { %v882_v63 = vadd.f32 %v881_v62, %v880_v61  ;;  %v883_v0 = vpop.f32.mrb[6].mxu1  ;;  %v529_v1 = vpack.c.bf16 %v514_v60, %v513_v59 }
 0x1c6   :  { %v884_v2 = vpop.f32.mrb[7].mxu1 }
 0x1c7   :  { %v459_v3 = vadd.f32 %v882_v63, %v1287_v47  ;;  %v885_v4 = vadd.f32 %v884_v2, %v883_v0  ;;  %963 = vmatprep.mubr.bf16.mxu0 %v529_v1 }
 0x1c9   :  { %v462_v5 = vadd.f32 %v885_v4, %v1287_v47  ;;  %v515_v6 = vmax.f32 %v459_v3, 0.0 }
 0x1cb   :  { %v516_v7 = vmax.f32 %v462_v5, 0.0  ;;  %v886_v8 = vpop.f32.mrb[8].mxu1 }
 0x1cc   :  { %v887_v9 = vpop.f32.mrb[9].mxu1 }
 0x1cd   :  { %v530_v10 = vpack.c.bf16 %v516_v7, %v515_v6  ;;  %v888_v11 = vadd.f32 %v887_v9, %v886_v8  ;;  %v889_v12 = vpop.f32.mrb[10].mxu1 }
 0x1ce   :  { %v890_v13 = vpop.f32.mrb[11].mxu1 }
 0x1cf   :  { %v467_v14 = vadd.f32 %v888_v11, %v1287_v47  ;;  %v891_v15 = vadd.f32 %v890_v13, %v889_v12  ;;  %964 = vmatmul.mubr.bf16.vlgmr.msra.gmra.mrb[32].mxu0 %v530_v10 }
 0x1d1   :  { %v470_v16 = vadd.f32 %v891_v15, %v1287_v47  ;;  %v517_v17 = vmax.f32 %v467_v14, 0.0  ;;  %v1038_v14 = vmov 0.0   ;;  %v14_v15 = vstv %s1361_s8 }
 0x1d2   :  { %979 = vmatprep.subr.bf16.mxu1 %v1038_v14  ;;  %995 = vmatprep.mubr.msk.bf16.mxu1 %vm1039_vm1, %v1038_v14  ;;  %15 = vst [vmem:[#allocation2] sm:$0x1] %v14_v15 }
 0x1d3   :  { %v518_v18 = vmax.f32 %v470_v16, 0.0  ;;  %v892_v19 = vpop.f32.mrb[12].mxu1 }
 0x1d4   :  { %v893_v20 = vpop.f32.mrb[13].mxu1 }
 0x1d5   :  { %v894_v21 = vadd.f32 %v893_v20, %v892_v19  ;;  %v895_v22 = vpop.f32.mrb[14].mxu1  ;;  %v531_v23 = vpack.c.bf16 %v518_v18, %v517_v17 }
 0x1d6   :  { %v896_v24 = vpop.f32.mrb[15].mxu1 }
 0x1d7   :  { %v475_v25 = vadd.f32 %v894_v21, %v1287_v47  ;;  %v897_v26 = vadd.f32 %v896_v24, %v895_v22  ;;  %967 = vmatprep.mubr.bf16.mxu0 %v531_v23 }
 0x1d9   :  { %v478_v27 = vadd.f32 %v897_v26, %v1287_v47  ;;  %v519_v28 = vmax.f32 %v475_v25, 0.0  ;;  %v730_v16 = vld [vmem:[#allocation2] sm:$0x1] }
 0x1da   :  { %733 = vperm.xlu0 %1002, %v730_v16  }
 0x1db   :  { %v520_v29 = vmax.f32 %v478_v27, 0.0  ;;  %v898_v30 = vpop.f32.mrb[16].mxu1 }
 0x1dc   :  { %v899_v31 = vpop.f32.mrb[17].mxu1 }
 0x1dd   :  { %v900_v32 = vadd.f32 %v899_v31, %v898_v30  ;;  %v901_v33 = vpop.f32.mrb[18].mxu1  ;;  %v532_v34 = vpack.c.bf16 %v520_v29, %v519_v28 }
 0x1de   :  { %v902_v35 = vpop.f32.mrb[19].mxu1 }
 0x1df   :  { %v483_v36 = vadd.f32 %v900_v32, %v1287_v47  ;;  %v903_v37 = vadd.f32 %v902_v35, %v901_v33  ;;  %968 = vmatmul.mubr.bf16.gmra.mrb[36].mxu0 %v532_v34 }
 0x1e1   :  { %v486_v38 = vadd.f32 %v903_v37, %v1287_v47  ;;  %v521_v39 = vmax.f32 %v483_v36, 0.0 }
 0x1e3   :  { %v522_v40 = vmax.f32 %v486_v38, 0.0  ;;  %v904_v41 = vpop.f32.mrb[20].mxu1 }
 0x1e4   :  { %v905_v42 = vpop.f32.mrb[21].mxu1 }
 0x1e5   :  { %v906_v43 = vadd.f32 %v905_v42, %v904_v41  ;;  %v907_v44 = vpop.f32.mrb[22].mxu1  ;;  %v533_v45 = vpack.c.bf16 %v522_v40, %v521_v39 }
 0x1e6   :  { %v908_v46 = vpop.f32.mrb[23].mxu1 }
 0x1e7   :  { %v491_v56 = vadd.f32 %v906_v43, %v1287_v47  ;;  %v909_v57 = vadd.f32 %v908_v46, %v907_v44  ;;  %971 = vmatprep.mubr.bf16.mxu0 %v533_v45 }
 0x1e9   :  { %v494_v48 = vadd.f32 %v909_v57, %v1287_v47  ;;  %v523_v49 = vmax.f32 %v491_v56, 0.0 }
 0x1eb   :  { %v524_v50 = vmax.f32 %v494_v48, 0.0  ;;  %v910_v51 = vpop.f32.mrb[24].mxu1 }
 0x1ec   :  { %v911_v54 = vpop.f32.mrb[25].mxu1 }
 0x1ed   :  { %v912_v55 = vadd.f32 %v911_v54, %v910_v51  ;;  %v913_v58 = vpop.f32.mrb[26].mxu1  ;;  %v534_v59 = vpack.c.bf16 %v524_v50, %v523_v49 }
 0x1ee   :  { %v914_v60 = vpop.f32.mrb[27].mxu1 }
 0x1ef   :  { %v499_v61 = vadd.f32 %v912_v55, %v1287_v47  ;;  %v915_v62 = vadd.f32 %v914_v60, %v913_v58  ;;  %972 = vmatmul.mubr.bf16.gmra.mrb[40].mxu0 %v534_v59 }
 0x1f1   :  { %v502_v63 = vadd.f32 %v915_v62, %v1287_v47  ;;  %v525_v0 = vmax.f32 %v499_v61, 0.0 }
 0x1f3   :  { %v526_v1 = vmax.f32 %v502_v63, 0.0  ;;  %v916_v2 = vpop.f32.mrb[28].mxu1 }
 0x1f4   :  { %v917_v3 = vpop.f32.mrb[29].mxu1 }
 0x1f5   :  { %v918_v4 = vadd.f32 %v917_v3, %v916_v2  ;;  %v919_v5 = vpop.f32.mrb[30].mxu1  ;;  %v535_v6 = vpack.c.bf16 %v526_v1, %v525_v0 }
 0x1f6   :  { %v920_v7 = vpop.f32.mrb[31].mxu1 }
 0x1f7   :  { %v507_v8 = vadd.f32 %v918_v4, %v1287_v47  ;;  %v921_v9 = vadd.f32 %v920_v7, %v919_v5  ;;  %975 = vmatprep.mubr.bf16.mxu0 %v535_v6 }
 0x1f9   :  { %v510_v10 = vadd.f32 %v921_v9, %v1287_v47  ;;  %v527_v11 = vmax.f32 %v507_v8, 0.0  ;;  %v1313_v47 = vld [vmem:[%s1362_s6] ss:$0 sm:$0xff] }
 0x1fb   :  { %v528_v12 = vmax.f32 %v510_v10, 0.0 }
 0x1fd   :  { %v536_v13 = vpack.c.bf16 %v528_v12, %v527_v11 }
 0x1ff   :  { %976 = vmatmul.mubr.bf16.gmra.mrb[44].mxu0 %v536_v13 }
 0x2a2   :  { %v965_v17 = vpop.f32.mrb[32].mxu0 }
 0x2a3   :  { %v651_v18 = vadd.f32 %v965_v17, %v1313_v47  ;;  %v642_v19 = vpop.f32.mrb[33].mxu0 }
 0x2a4   :  { %v643_v20 = vadd.f32 %v1313_v47, %v642_v19  ;;  %v966_v21 = vpop.f32.mrb[34].mxu0 }
 0x2a5   :  { %v654_v22 = vadd.f32 %v966_v21, %v1313_v47  ;;  %v645_v23 = vpop.f32.mrb[35].mxu0  ;;  %v707_v25 = vmax.f32 %v651_v18, 0.0  ;;  %v734_v21 = vpop.permute.xlu0 %733 }
 0x2a6   :  { %v646_v24 = vadd.f32 %v1313_v47, %v645_v23  ;;  %v705_v27 = vmax.f32 %v643_v20, 0.0 }
 0x2a7   :  { %v708_v26 = vmax.f32 %v654_v22, 0.0  ;;  %v739_v22 = vrot.slane %v734_v21, %v67_v53 }
 0x2a8   :  { %v706_v28 = vmax.f32 %v646_v24, 0.0 }
 0x2a9   :  { %v722_v29 = vpack.c.bf16 %v708_v26, %v707_v25 }
 0x2aa   :  { %v721_v30 = vpack.c.bf16 %v706_v28, %v705_v27 }
 0x2ab   :  { %v748_v37 = vsel %vm740_vm2, %v722_v29, 0 }
 0x2ac   :  { %v745_v31 = vsel %vm740_vm2, %v721_v30, 0 }
 0x2ad   :  { %980 = vmatpush3.bf16.xpose.msra.mxu1 %v745_v31 }
 0x2ae   :  { %981 = vmatprep.subr.bf16.mxu1 %v1038_v14 }
 0x2b2   :  { %v969_v32 = vpop.f32.mrb[36].mxu0 }
 0x2b3   :  { %v667_v33 = vadd.f32 %v969_v32, %v1313_v47  ;;  %v658_v34 = vpop.f32.mrb[37].mxu0 }
 0x2b4   :  { %v659_v35 = vadd.f32 %v1313_v47, %v658_v34  ;;  %v970_v36 = vpop.f32.mrb[38].mxu0 }
 0x2b5   :  { %v670_v38 = vadd.f32 %v970_v36, %v1313_v47  ;;  %v661_v39 = vpop.f32.mrb[39].mxu0  ;;  %982 = vmatpush3.bf16.xpose.msra.mxu1 %v748_v37  ;;  %v711_v41 = vmax.f32 %v667_v33, 0.0 }
 0x2b6   :  { %v662_v40 = vadd.f32 %v1313_v47, %v661_v39  ;;  %983 = vmatprep.subr.bf16.mxu1 %v1038_v14  ;;  %v709_v43 = vmax.f32 %v659_v35, 0.0 }
 0x2b7   :  { %v712_v42 = vmax.f32 %v670_v38, 0.0 }
 0x2b8   :  { %v710_v44 = vmax.f32 %v662_v40, 0.0 }
 0x2b9   :  { %v724_v45 = vpack.c.bf16 %v712_v42, %v711_v41 }
 0x2ba   :  { %v723_v46 = vpack.c.bf16 %v710_v44, %v709_v43 }
 0x2bb   :  { %v754_v54 = vsel %vm740_vm2, %v724_v45, 0 }
 0x2bc   :  { %v751_v56 = vsel %vm740_vm2, %v723_v46, 0 }
 0x2bd   :  { %984 = vmatpush3.bf16.xpose.msra.mxu1 %v751_v56 }
 0x2be   :  { %985 = vmatprep.subr.bf16.mxu1 %v1038_v14 }
 0x2c2   :  { %v973_v57 = vpop.f32.mrb[40].mxu0 }
 0x2c3   :  { %v683_v48 = vadd.f32 %v973_v57, %v1313_v47  ;;  %v674_v49 = vpop.f32.mrb[41].mxu0 }
 0x2c4   :  { %v675_v50 = vadd.f32 %v1313_v47, %v674_v49  ;;  %v974_v51 = vpop.f32.mrb[42].mxu0 }
 0x2c5   :  { %v686_v55 = vadd.f32 %v974_v51, %v1313_v47  ;;  %v677_v58 = vpop.f32.mrb[43].mxu0  ;;  %986 = vmatpush3.bf16.xpose.msra.mxu1 %v754_v54  ;;  %v715_v60 = vmax.f32 %v683_v48, 0.0 }
 0x2c6   :  { %v678_v59 = vadd.f32 %v1313_v47, %v677_v58  ;;  %987 = vmatprep.subr.bf16.mxu1 %v1038_v14  ;;  %v713_v62 = vmax.f32 %v675_v50, 0.0 }
 0x2c7   :  { %v716_v61 = vmax.f32 %v686_v55, 0.0 }
 0x2c8   :  { %v714_v63 = vmax.f32 %v678_v59, 0.0 }
 0x2c9   :  { %v726_v0 = vpack.c.bf16 %v716_v61, %v715_v60 }
 0x2ca   :  { %v725_v1 = vpack.c.bf16 %v714_v63, %v713_v62 }
 0x2cb   :  { %v760_v8 = vsel %vm740_vm2, %v726_v0, 0 }
 0x2cc   :  { %v757_v2 = vsel %vm740_vm2, %v725_v1, 0 }
 0x2cd   :  { %988 = vmatpush3.bf16.xpose.msra.mxu1 %v757_v2 }
 0x2ce   :  { %989 = vmatprep.subr.bf16.mxu1 %v1038_v14 }
 0x2d2   :  { %v977_v3 = vpop.f32.mrb[44].mxu0 }
 0x2d3   :  { %v699_v4 = vadd.f32 %v977_v3, %v1313_v47  ;;  %v690_v5 = vpop.f32.mrb[45].mxu0 }
 0x2d4   :  { %v691_v6 = vadd.f32 %v1313_v47, %v690_v5  ;;  %v978_v7 = vpop.f32.mrb[46].mxu0 }
 0x2d5   :  { %v702_v9 = vadd.f32 %v978_v7, %v1313_v47  ;;  %v693_v10 = vpop.f32.mrb[47].mxu0  ;;  %990 = vmatpush3.bf16.xpose.msra.mxu1 %v760_v8  ;;  %v719_v12 = vmax.f32 %v699_v4, 0.0 }
 0x2d6   :  { %v694_v11 = vadd.f32 %v1313_v47, %v693_v10  ;;  %991 = vmatprep.subr.bf16.mxu1 %v1038_v14  ;;  %v717_v15 = vmax.f32 %v691_v6, 0.0  ;;  %v729_v47 = vld [vmem:[%s1363_s7] sm:$0x1] }
 0x2d7   :  { %v720_v13 = vmax.f32 %v702_v9, 0.0 }
 0x2d8   :  { %v718_v16 = vmax.f32 %v694_v11, 0.0 }
 0x2d9   :  { %v728_v17 = vpack.c.bf16 %v720_v13, %v719_v12 }
 0x2da   :  { %v727_v18 = vpack.c.bf16 %v718_v16, %v717_v15 }
 0x2db   :  { %v766_v20 = vsel %vm740_vm2, %v728_v17, 0 }
 0x2dc   :  { %v763_v19 = vsel %vm740_vm2, %v727_v18, 0 }
 0x2dd   :  { %992 = vmatpush3.bf16.xpose.msra.mxu1 %v763_v19 }
 0x2de   :  { %993 = vmatprep.subr.bf16.mxu1 %v1038_v14 }
 0x2e5   :  { %994 = vmatpush3.bf16.xpose.msra.mxu1 %v766_v20 }
 0x2ec   :  { %996 = vmatmul.mubr.msk.bf16.vlgmr.msra.gmra.mrb[32].mxu1 %vm740_vm2, %v729_v47 }
 0x3bf   :  { %v802_v23 = vpop.f32.mrb[32].mxu1 }
 0x3c0   :  { %v803_v24 = vadd.f32 %v802_v23, %v739_v22  ;;  %v997_v25 = vpop.f32.mrb[33].mxu1 }
 0x3c1   :  { %v805_v26 = vpop.f32.mrb[34].mxu1 }
 0x3c2   :  { %v808_v27 = vsub.f32 0.0, %v803_v24  ;;  %v998_v28 = vpop.f32.mrb[35].mxu1 }
 0x3c4   :  { %v809_v14 = vmul.f32 1.442695, %v808_v27 }
 0x3c6   :  { %1033 = vpow2.f32 %v809_v14 }
 0x3d0   :  { %v1034_v29 = vpop.eup %1033 }
 0x3d1   :  { %v811_v30 = vadd.f32 1.0, %v1034_v29 }
 0x3d3   :  { %1035 = vrcp.f32 %v811_v30 }
 0x3dd   :  { %v1036_v31 = vpop.eup %1035 }
 0x3de   :  { %814 = vst [vmem:[%s1364_s9] sm:$0x1] %v1036_v31 }

</bundles_post_ra>
